<compile_context>
chip_gen: v6e
topology: v6e:2x2x1
jax: 0.10.0
libtpu: 0.0.40
codegen_flags: <defaults>
</compile_context>

<pallas_src>
import functools

import jax
import jax.numpy as jnp
from jax import lax
from jax.experimental import pallas as pl
from jax.experimental.pallas import tpu as pltpu

_MiB = 1024 * 1024


def _round_up(x, m):
    return ((x + m - 1) // m) * m


def _tpu_defaults():
    """Per-generation tile sizes / VMEM limit, keyed off VMEM capacity."""
    try:
        cap = int(pltpu.get_tpu_info().vmem_capacity_bytes)
    except Exception:
        cap = 64 * _MiB  # conservative fallback (v7x-safe)
    if cap > 64 * _MiB:  # 128 MiB class: v5e / v6e
        return {"tm": 1024, "ti": 512,
                "vmem_limit_bytes": max(32 * _MiB, min(cap - 16 * _MiB, 112 * _MiB))}
    # 64 MiB class: v7x — leave headroom for compiler-internal scratch.
    return {"tm": 768, "ti": 256,
            "vmem_limit_bytes": max(32 * _MiB, min(cap - 8 * _MiB, 56 * _MiB))}


def _bspec(block_shape, index_map, buffers=None):
    """BlockSpec with an optional explicit buffer count (graceful fallback)."""
    if buffers is None or not hasattr(pl, "Buffered"):
        return pl.BlockSpec(block_shape, index_map)
    try:
        return pl.BlockSpec(block_shape, index_map, pipeline_mode=pl.Buffered(buffers))
    except TypeError:  # older BlockSpec signature without pipeline_mode
        return pl.BlockSpec(block_shape, index_map)


def prepare_weights(w_gate, w_up, w_down, *, ti=None):
    """One-time weight prep (do this OUTSIDE the hot path).

    PyTorch layout in:  w_gate/w_up: (I, H), w_down: (H, I).
    Returns (w_gate, w_up, w_down_t, ti_eff) with
      * w_down transposed to (I, H) -> contiguous tile DMAs + native (K, N) RHS,
      * intermediate dim zero-padded to a multiple of ti_eff (padded channels
        contribute exactly zero: silu(0)*0 = 0 and the matching down rows are 0).
    """
    if ti is None:
        ti = _tpu_defaults()["ti"]
    I, H = w_gate.shape
    assert w_up.shape == (I, H), "up_proj weight must be (I, H)"
    assert w_down.shape == (H, I), "down_proj weight must be (H, I)"
    ti_eff = _round_up(max(8, min(int(ti), _round_up(I, 8))), 8)
    i_pad = _round_up(I, ti_eff)
    w_down_t = jnp.swapaxes(w_down, 0, 1)  # (I, H)
    if i_pad != I:
        pad = ((0, i_pad - I), (0, 0))
        w_gate = jnp.pad(w_gate, pad)
        w_up = jnp.pad(w_up, pad)
        w_down_t = jnp.pad(w_down_t, pad)
    return w_gate, w_up, w_down_t, ti_eff


def _mlp_kernel(x_ref, wg_ref, wu_ref, wd_ref, o_ref, acc_ref):
    """One (split, token-tile, I-tile) step of down(silu(x@Wg.T) * (x@Wu.T)) @ Wd.T.

    x_ref  : (tm, H)   token tile (single-buffered: invariant over the I loop)
    wg_ref : (ti, H)   gate_proj weight tile, (out, in) layout
    wu_ref : (ti, H)   up_proj weight tile,   (out, in) layout
    wd_ref : (ti, H)   down_proj weight tile, pre-transposed to (in, out)
    o_ref  : (tm, H)   (partial) output tile, resident across the I axis
    acc_ref: (tm, H)   f32 accumulator scratch
    """
    j = pl.program_id(2)

    @pl.when(j == 0)
    def _():
        acc_ref[...] = jnp.zeros_like(acc_ref)

    x = x_ref[...]
    # Gate/up: contract the shared "in" dim (dim 1 of both operands): x @ W.T.
    # The (ti, H) weight tiling keeps the weight DMAs fully contiguous.
    dn_nt = (((1,), (1,)), ((), ()))
    gate = lax.dot_general(x, wg_ref[...], dn_nt, preferred_element_type=jnp.float32)
    up = lax.dot_general(x, wu_ref[...], dn_nt, preferred_element_type=jnp.float32)

    # SiLU(gate) * up in f32 (sigmoid on EUP, mul on VPU), then back to the
    # native dtype so the down-proj matmul runs at full MXU rate.
    hidden = ((gate * jax.nn.sigmoid(gate)) * up).astype(x_ref.dtype)

    # Partial down-proj, native NN form: (tm, ti) @ (ti, H).
    dn_nn = (((1,), (0,)), ((), ()))
    acc_ref[...] += lax.dot_general(hidden, wd_ref[...], dn_nn,
                                    preferred_element_type=jnp.float32)

    @pl.when(j == pl.num_programs(2) - 1)
    def _():
        o_ref[...] = acc_ref[...].astype(o_ref.dtype)


@functools.partial(jax.jit, static_argnames=("tm", "ti", "vmem_limit_bytes"))
def _mlp_impl(x, w_gate, w_up, w_down_t, *, tm, ti, vmem_limit_bytes):
    B, S, H = x.shape
    I = w_gate.shape[0]
    assert w_gate.shape == (I, H) and w_up.shape == (I, H) and w_down_t.shape == (I, H)
    assert I % ti == 0, "prepare_weights() must pad I to a multiple of ti"

    M = B * S
    x2d = x.reshape(M, H)

    # Token tile: as large as requested but never larger than the padded token
    # count; rounded to the dtype-native sublane pack (8 f32 / 16 bf16 / 32 i8).
    pack = max(8, 32 // jnp.dtype(x.dtype).itemsize)
    tm_eff = _round_up(min(tm, _round_up(M, pack)), pack)
    m_pad = _round_up(M, tm_eff)
    if m_pad != M:
        x2d = jnp.pad(x2d, ((0, m_pad - M), (0, 0)))  # zero rows contribute zero

    m_tiles = m_pad // tm_eff
    j_tiles = I // ti

    # Decode-style calls (one token tile): split the I axis over a leading
    # "parallel" grid dim so both v7x TensorCores stream weights concurrently;
    # the partial (M, H) sums are reduced outside the kernel.
    n_split = 2 if (m_tiles == 1 and j_tiles >= 2 and j_tiles % 2 == 0) else 1
    j_per_split = j_tiles // n_split
    out_dtype = x.dtype if n_split == 1 else jnp.float32

    w_index = lambda p, i, j: (p * j_per_split + j, 0)

    out3d = pl.pallas_call(
        _mlp_kernel,
        out_shape=jax.ShapeDtypeStruct((n_split, m_pad, H), out_dtype),
        grid_spec=pltpu.PrefetchScalarGridSpec(
            num_scalar_prefetch=0,
            grid=(n_split, m_tiles, j_per_split),
            in_specs=[
                # x is invariant over the inner I loop -> single buffer.
                _bspec((tm_eff, H), lambda p, i, j: (i, 0), buffers=1),
                _bspec((ti, H), w_index),          # gate W tile
                _bspec((ti, H), w_index),          # up   W tile
                _bspec((ti, H), w_index),          # down W^T tile
            ],
            # Output is resident across the I loop -> single buffer.
            out_specs=_bspec((None, tm_eff, H), lambda p, i, j: (p, i, 0), buffers=1),
            scratch_shapes=[pltpu.VMEM((tm_eff, H), jnp.float32)],
        ),
        compiler_params=pltpu.CompilerParams(
            # Split / token axes shard across TensorCores (megacore); the I axis
            # carries the accumulator, so it stays "arbitrary" (and last).
            dimension_semantics=("parallel", "parallel", "arbitrary"),
            vmem_limit_bytes=vmem_limit_bytes,
        ),
    )(x2d, w_gate, w_up, w_down_t)

    out2d = out3d[0] if n_split == 1 else out3d.sum(axis=0).astype(x.dtype)
    if m_pad != M:
        out2d = out2d[:M]
    return out2d.reshape(B, S, H)


def llama_mlp_super(x, w_gate, w_up, w_down, *, tm=None, ti=None, vmem_limit_bytes=None):
    """LlamaMLP_Super.forward. x: (B, S, H); weights in PyTorch (out, in) layout.

    Convenience wrapper; in production call prepare_weights() once and reuse it.
    """
    wg, wu, wdt, ti_eff = prepare_weights(w_gate, w_up, w_down, ti=ti)
    defaults = _tpu_defaults()
    tm = defaults["tm"] if tm is None else int(tm)
    vmem_limit_bytes = (defaults["vmem_limit_bytes"]
                        if vmem_limit_bytes is None else int(vmem_limit_bytes))
    return _mlp_impl(x, wg, wu, wdt, tm=tm, ti=ti_eff, vmem_limit_bytes=vmem_limit_bytes)


def _reference(x, w_gate, w_up, w_down):
    """Pure-JAX f32 reference mirroring the PyTorch forward."""
    xf = x.astype(jnp.float32)
    g = jnp.einsum("bsh,ih->bsi", xf, w_gate.astype(jnp.float32))
    u = jnp.einsum("bsh,ih->bsi", xf, w_up.astype(jnp.float32))
    h = jax.nn.silu(g) * u
    return jnp.einsum("bsi,hi->bsh", h, w_down.astype(jnp.float32))


if __name__ == "__main__":
    # --- Test 1: toy shapes matching the module (batch=2, seq=8, H=32, I=64) ---
    B, S, H, I = 2, 8, 32, 64
    k = jax.random.split(jax.random.PRNGKey(0), 4)
    x = jax.random.normal(k[0], (B, S, H), dtype=jnp.float32)
    w_gate = jax.random.normal(k[1], (I, H), dtype=jnp.float32) * 0.05
    w_up = jax.random.normal(k[2], (I, H), dtype=jnp.float32) * 0.05
    w_down = jax.random.normal(k[3], (H, I), dtype=jnp.float32) * 0.05
    out = jax.block_until_ready(llama_mlp_super(x, w_gate, w_up, w_down))
    ref = _reference(x, w_gate, w_up, w_down)
    assert out.shape == (B, S, H)
    assert jnp.allclose(out, ref, atol=1e-4, rtol=1e-4), "test1: mismatch vs reference"

    # --- Test 2: decode-style (single token tile) -> exercises the I-split path ---
    B, S, H, I = 1, 8, 128, 256
    k = jax.random.split(jax.random.PRNGKey(1), 4)
    x = jax.random.normal(k[0], (B, S, H), dtype=jnp.float32)
    w_gate = jax.random.normal(k[1], (I, H), dtype=jnp.float32) * 0.05
    w_up = jax.random.normal(k[2], (I, H), dtype=jnp.float32) * 0.05
    w_down = jax.random.normal(k[3], (H, I), dtype=jnp.float32) * 0.05
    out = jax.block_until_ready(llama_mlp_super(x, w_gate, w_up, w_down, ti=64))
    ref = _reference(x, w_gate, w_up, w_down)
    assert jnp.allclose(out, ref, atol=1e-4, rtol=1e-4), "test2: mismatch vs reference"

    # --- Test 3: bf16 inputs/weights (f32 accumulation inside the kernel) ---
    B, S, H, I = 2, 16, 128, 256
    k = jax.random.split(jax.random.PRNGKey(2), 4)
    x = jax.random.normal(k[0], (B, S, H), dtype=jnp.bfloat16)
    w_gate = (jax.random.normal(k[1], (I, H), dtype=jnp.float32) * 0.05).astype(jnp.bfloat16)
    w_up = (jax.random.normal(k[2], (I, H), dtype=jnp.float32) * 0.05).astype(jnp.bfloat16)
    w_down = (jax.random.normal(k[3], (H, I), dtype=jnp.float32) * 0.05).astype(jnp.bfloat16)
    out = jax.block_until_ready(llama_mlp_super(x, w_gate, w_up, w_down))
    ref = _reference(x, w_gate, w_up, w_down)
    assert jnp.allclose(out.astype(jnp.float32), ref, atol=3e-2, rtol=3e-2), \
        "test3: bf16 mismatch vs f32 reference"

    print("KERNEL_OK")
</pallas_src>

<mosaic_0001>
module attributes {stable_mosaic.version = 11 : i64} {
  func.func @_mlp_kernel(%arg0: i32, %arg1: i32, %arg2: i32, %arg3: memref<16x32xf32, #tpu.memory_space<vmem>>, %arg4: memref<64x32xf32, #tpu.memory_space<vmem>>, %arg5: memref<64x32xf32, #tpu.memory_space<vmem>>, %arg6: memref<64x32xf32, #tpu.memory_space<vmem>>, %arg7: memref<1x16x32xf32, #tpu.memory_space<vmem>>, %arg8: memref<16x32xf32, #tpu.memory_space<vmem>>) attributes {dimension_semantics = [#tpu.dimension_semantics<parallel>, #tpu.dimension_semantics<parallel>, #tpu.dimension_semantics<arbitrary>], iteration_bounds = array<i64: 1, 1, 1>, scalar_prefetch = 0 : i64, scratch_operands = 1 : i64, tpu.core_type = #tpu.core_type<tc>, window_params = [{pipeline_mode = #tpu.pipeline_mode<synchronous>, transform_indices = @transform_0, window_bounds = array<i64: 16, 32>}, {transform_indices = @transform_1, window_bounds = array<i64: 64, 32>}, {transform_indices = @transform_2, window_bounds = array<i64: 64, 32>}, {transform_indices = @transform_3, window_bounds = array<i64: 64, 32>}, {pipeline_mode = #tpu.pipeline_mode<synchronous>, transform_indices = @transform_4, window_bounds = array<i64: 1, 16, 32>}]} {
    %c0_i32 = arith.constant 0 : i32
    %0 = arith.cmpi eq, %arg2, %c0_i32 : i32
    %1 = arith.extui %0 : i1 to i32
    %c0_i32_0 = arith.constant 0 : i32
    %2 = arith.cmpi ne, %1, %c0_i32_0 : i32
    scf.if %2 {
      %cst_17 = arith.constant 0.000000e+00 : f32
      %23 = vector.broadcast %cst_17 : f32 to vector<16x32xf32>
      %c0_18 = arith.constant 0 : index
      %c0_19 = arith.constant 0 : index
      %24 = vector.load %arg8[%c0_18, %c0_19] : memref<16x32xf32, #tpu.memory_space<vmem>>, vector<16x32xf32>
      tpu.vector_store %arg8[%c0_18, %c0_19], %23 {strides = array<i32>} : memref<16x32xf32, #tpu.memory_space<vmem>>, vector<16x32xf32>,
    } else {
    }
    %c0 = arith.constant 0 : index
    %c0_1 = arith.constant 0 : index
    %3 = vector.load %arg3[%c0, %c0_1] : memref<16x32xf32, #tpu.memory_space<vmem>>, vector<16x32xf32>
    %c0_2 = arith.constant 0 : index
    %c0_3 = arith.constant 0 : index
    %4 = vector.load %arg4[%c0_2, %c0_3] : memref<64x32xf32, #tpu.memory_space<vmem>>, vector<64x32xf32>
    %cst = arith.constant dense<0.000000e+00> : vector<16x64xf32>
    %5 = tpu.matmul %3, %4, %cst {dimension_numbers = #tpu.dot_dimension_numbers<[1], [1], [0], [0], [0, 0, 1, 0], [], []>} : vector<16x32xf32>, vector<64x32xf32>, vector<16x64xf32> -> vector<16x64xf32>
    %c0_4 = arith.constant 0 : index
    %c0_5 = arith.constant 0 : index
    %6 = vector.load %arg5[%c0_4, %c0_5] : memref<64x32xf32, #tpu.memory_space<vmem>>, vector<64x32xf32>
    %cst_6 = arith.constant dense<0.000000e+00> : vector<16x64xf32>
    %7 = tpu.matmul %3, %6, %cst_6 {dimension_numbers = #tpu.dot_dimension_numbers<[1], [1], [0], [0], [0, 0, 1, 0], [], []>} : vector<16x32xf32>, vector<64x32xf32>, vector<16x64xf32> -> vector<16x64xf32>
    %8 = arith.negf %5 : vector<16x64xf32>
    %9 = math.exp %8 : vector<16x64xf32>
    %cst_7 = arith.constant 1.000000e+00 : f32
    %10 = vector.broadcast %cst_7 : f32 to vector<16x64xf32>
    %11 = arith.addf %10, %9 : vector<16x64xf32>
    %12 = arith.divf %10, %11 : vector<16x64xf32>
    %13 = arith.mulf %5, %12 : vector<16x64xf32>
    %14 = arith.mulf %13, %7 : vector<16x64xf32>
    %c0_8 = arith.constant 0 : index
    %c0_9 = arith.constant 0 : index
    %15 = vector.load %arg8[%c0_8, %c0_9] : memref<16x32xf32, #tpu.memory_space<vmem>>, vector<16x32xf32>
    %c0_10 = arith.constant 0 : index
    %c0_11 = arith.constant 0 : index
    %16 = vector.load %arg6[%c0_10, %c0_11] : memref<64x32xf32, #tpu.memory_space<vmem>>, vector<64x32xf32>
    %cst_12 = arith.constant dense<0.000000e+00> : vector<16x32xf32>
    %17 = tpu.matmul %14, %16, %cst_12 {dimension_numbers = #tpu.dot_dimension_numbers<[1], [0], [0], [1], [0, 0, 1, 1], [], []>} : vector<16x64xf32>, vector<64x32xf32>, vector<16x32xf32> -> vector<16x32xf32>
    %18 = arith.addf %15, %17 : vector<16x32xf32>
    %c0_13 = arith.constant 0 : index
    %c0_14 = arith.constant 0 : index
    %19 = vector.load %arg8[%c0_13, %c0_14] : memref<16x32xf32, #tpu.memory_space<vmem>>, vector<16x32xf32>
    tpu.vector_store %arg8[%c0_13, %c0_14], %18 {strides = array<i32>} : memref<16x32xf32, #tpu.memory_space<vmem>>, vector<16x32xf32>,
    %c0_i32_15 = arith.constant 0 : i32
    %20 = arith.cmpi eq, %arg2, %c0_i32_15 : i32
    %21 = arith.extui %20 : i1 to i32
    %c0_i32_16 = arith.constant 0 : i32
    %22 = arith.cmpi ne, %21, %c0_i32_16 : i32
    scf.if %22 {
      %c0_17 = arith.constant 0 : index
      %c0_18 = arith.constant 0 : index
      %23 = vector.load %arg8[%c0_17, %c0_18] : memref<16x32xf32, #tpu.memory_space<vmem>>, vector<16x32xf32>
      %c0_19 = arith.constant 0 : index
      %c0_20 = arith.constant 0 : index
      %c0_21 = arith.constant 0 : index
      %24 = vector.load %arg7[%c0_19, %c0_20, %c0_21] : memref<1x16x32xf32, #tpu.memory_space<vmem>>, vector<1x16x32xf32>
      %25 = vector.shape_cast %24 : vector<1x16x32xf32> to vector<16x32xf32>
      %26 = vector.shape_cast %23 : vector<16x32xf32> to vector<1x16x32xf32>
      tpu.vector_store %arg7[%c0_19, %c0_20, %c0_21], %26 {strides = array<i32>} : memref<1x16x32xf32, #tpu.memory_space<vmem>>, vector<1x16x32xf32>,
    } else {
    }
    return
  }
  func.func @transform_0(%arg0: i32, %arg1: i32, %arg2: i32) -> (i32, i32) {
    %c0_i32 = arith.constant 0 : i32
    %c0_i32_0 = arith.constant 0 : i32
    return %arg1, %c0_i32 : i32, i32
  }
  func.func @transform_1(%arg0: i32, %arg1: i32, %arg2: i32) -> (i32, i32) {
    %c1_i32 = arith.constant 1 : i32
    %0 = arith.muli %arg0, %c1_i32 : i32
    %1 = arith.addi %0, %arg2 : i32
    %c0_i32 = arith.constant 0 : i32
    %c0_i32_0 = arith.constant 0 : i32
    return %1, %c0_i32 : i32, i32
  }
  func.func @transform_2(%arg0: i32, %arg1: i32, %arg2: i32) -> (i32, i32) {
    %c1_i32 = arith.constant 1 : i32
    %0 = arith.muli %arg0, %c1_i32 : i32
    %1 = arith.addi %0, %arg2 : i32
    %c0_i32 = arith.constant 0 : i32
    %c0_i32_0 = arith.constant 0 : i32
    return %1, %c0_i32 : i32, i32
  }
  func.func @transform_3(%arg0: i32, %arg1: i32, %arg2: i32) -> (i32, i32) {
    %c1_i32 = arith.constant 1 : i32
    %0 = arith.muli %arg0, %c1_i32 : i32
    %1 = arith.addi %0, %arg2 : i32
    %c0_i32 = arith.constant 0 : i32
    %c0_i32_0 = arith.constant 0 : i32
    return %1, %c0_i32 : i32, i32
  }
  func.func @transform_4(%arg0: i32, %arg1: i32, %arg2: i32) -> (i32, i32, i32) {
    %c0_i32 = arith.constant 0 : i32
    %c0_i32_0 = arith.constant 0 : i32
    return %arg0, %arg1, %c0_i32 : i32, i32, i32
  }
}

</mosaic_0001>

<bundles_post_ra>
// kernel: _mlp_impl.1
= control target key start
LH: loop header
LB: loop body
LE: loop exit
PB: predicated region body
PF: predicated region fallthrough
CT: control target
= control target key end

     0   :  { %vm88_vm0 = vcmask 261120   ;;  %s764_s0 = inlined_call_operand.vmem [shape: f32[16,32], index: 0, kind: input, shape index: {}]   ;;  %s765_s1 = inlined_call_operand.vmem [shape: f32[64,32], index: 1, kind: input, shape index: {}]   ;;  %s766_s2 = inlined_call_operand.vmem [shape: f32[64,32], index: 2, kind: input, shape index: {}]   ;;  %s767_s3 = inlined_call_operand.vmem [shape: f32[64,32], index: 3, kind: input, shape index: {}]   ;;  %s768_s4 = inlined_call_operand.hbm [shape: f32[1,16,32], index: 4, kind: output, shape index: {}]  }
   0x1   :  { %v100_v0 = vld [vmem:[%s765_s1 + $0x38] sm:$0xff]  ;;  %v99_v1 = vld [vmem:[%s765_s1 + $0x30] sm:$0xff]  ;;  %v91_v2 = vld [vmem:[%s764_s0] sm:$0xff] }
   0x2   :  { %521 = vmatprep.subr.msk.mxu0 %vm88_vm0, %v100_v0  ;;  %537 = vmatprep.mubr.msk.f32.mxu0 %vm88_vm0, %v91_v2  ;;  %v214_v3 = vld [vmem:[%s766_s2 + $0x38] sm:$0xff]  ;;  %v213_v4 = vld [vmem:[%s766_s2 + $0x30] sm:$0xff]  ;;  %v98_v5 = vld [vmem:[%s765_s1 + $0x28] sm:$0xff] }
   0x3   :  { %522 = vmatpush3.xpose.msk.msra.mxu0 %vm88_vm0, %v100_v0  ;;  %540 = vmatprep.subr.msk.mxu1 %vm88_vm0, %v214_v3 }
   0x4   :  { %523 = vmatprep.subr.msk.mxu0 %vm88_vm0, %v99_v1  ;;  %556 = vmatprep.mubr.msk.f32.mxu1 %vm88_vm0, %v91_v2 }
   0x5   :  { %541 = vmatpush3.xpose.msk.msra.mxu1 %vm88_vm0, %v214_v3 }
   0x6   :  { %542 = vmatprep.subr.msk.mxu1 %vm88_vm0, %v213_v4 }
   0x7   :  { %524 = vmatpush3.xpose.msk.msra.mxu0 %vm88_vm0, %v99_v1 }
   0x8   :  { %9 = vsyncpa [#allocation4], 0  ;;  %525 = vmatprep.subr.msk.mxu0 %vm88_vm0, %v98_v5  ;;  %v212_v6 = vld [vmem:[%s766_s2 + $0x28] sm:$0xff]  ;;  %v97_v7 = vld [vmem:[%s765_s1 + $0x20] sm:$0xff]  ;;  %v612_v26 = vmov 0.0   ;;  %vm340_vm1 = vcmask 523264  }
   0x9   :  { %543 = vmatpush3.xpose.msk.msra.mxu1 %vm88_vm0, %v213_v4  ;;  %v211_v8 = vld [vmem:[%s766_s2 + $0x20] sm:$0xff]  ;;  %v96_v9 = vld [vmem:[%s765_s1 + $0x18] sm:$0xff]  ;;  %v95_v11 = vld [vmem:[%s765_s1 + $0x10] sm:$0xff]  ;;  %90 = vst.msk [vmem:[#allocation2 + $0x8] sm:$0xff] %vm88_vm0, %v612_v26 }
   0xa   :  { %544 = vmatprep.subr.msk.mxu1 %vm88_vm0, %v212_v6  ;;  %v210_v10 = vld [vmem:[%s766_s2 + $0x18] sm:$0xff]  ;;  %v209_v12 = vld [vmem:[%s766_s2 + $0x10] sm:$0xff]  ;;  %v94_v13 = vld [vmem:[%s765_s1 + $0x8] sm:$0xff]  ;;  %89 = vst.msk [vmem:[#allocation2] sm:$0xff] %vm88_vm0, %v612_v26 }
   0xb   :  { %526 = vmatpush3.xpose.msk.msra.mxu0 %vm88_vm0, %v98_v5  ;;  %v208_v14 = vld [vmem:[%s766_s2 + $0x8] sm:$0xff]  ;;  %v93_v15 = vld [vmem:[%s765_s1] sm:$0xff]  ;;  %v339_v18 = vld [vmem:[%s767_s3 + $0x38] sm:$0xff] }
   0xc   :  { %527 = vmatprep.subr.msk.mxu0 %vm88_vm0, %v97_v7  ;;  %v207_v16 = vld [vmem:[%s766_s2] sm:$0xff]  ;;  %v92_v17 = vld [vmem:[%s764_s0 + $0x8] sm:$0xff]  ;;  %v338_v19 = vld [vmem:[%s767_s3 + $0x30] sm:$0xff] }
   0xd   :  { %545 = vmatpush3.xpose.msk.msra.mxu1 %vm88_vm0, %v212_v6  ;;  %v337_v20 = vld [vmem:[%s767_s3 + $0x28] sm:$0xff]  ;;  %v336_v21 = vld [vmem:[%s767_s3 + $0x20] sm:$0xff]  ;;  %v335_v22 = vld [vmem:[%s767_s3 + $0x18] sm:$0xff] }
   0xe   :  { %546 = vmatprep.subr.msk.mxu1 %vm88_vm0, %v211_v8  ;;  %v334_v23 = vld [vmem:[%s767_s3 + $0x10] sm:$0xff]  ;;  %v333_v24 = vld [vmem:[%s767_s3 + $0x8] sm:$0xff]  ;;  %v332_v25 = vld [vmem:[%s767_s3] sm:$0xff]  ;;  %s613_s3 = smov [#allocation3]  }
   0xf   :  { %528 = vmatpush3.xpose.msk.msra.mxu0 %vm88_vm0, %v97_v7  ;;  %s438_s12 = sshll.u32 %s613_s3, 4  ;;  %s439_s12 = int_to_ptr.vmem [resolvable:$true] %s438_s12 }
  0x10   :  { %529 = vmatprep.subr.msk.mxu0 %vm88_vm0, %v96_v9  ;;  %v331_v43 = vld [vmem:[#allocation2 + $0x8] sm:$0xff]  ;;  %s590_s13 = scalar_lea.vmem %s439_s12, 256  ;;  %p595_p1 = scmp.lt.s32.totalorder %s439_s12, %s439_s12 }
  0x11   :  { %547 = vmatpush3.xpose.msk.msra.mxu1 %vm88_vm0, %v211_v8  ;;  %v330_v45 = vld [vmem:[#allocation2] sm:$0xff]  ;;  %p591_p0 = scmp.ne.s32.totalorder %s439_s12, %s590_s13  ;;  %p596_p2 = scmp.lt.s32.totalorder %s590_s13, %s590_s13 }
  0x12   :  { %548 = vmatprep.subr.msk.mxu1 %vm88_vm0, %v210_v10 }
  0x13   :  { %530 = vmatpush3.xpose.msk.msra.mxu0 %vm88_vm0, %v96_v9  ;;  %p597_p3 = por %p596_p2, %p595_p1 }
  0x14   :  { %531 = vmatprep.subr.msk.mxu0 %vm88_vm0, %v95_v11 }
  0x15   :  { %549 = vmatpush3.xpose.msk.msra.mxu1 %vm88_vm0, %v210_v10  ;;  %p598_p4 = pnand %p597_p3, %p591_p0 }
  0x16   :  { %550 = vmatprep.subr.msk.mxu1 %vm88_vm0, %v209_v12 }
  0x17   :  { %532 = vmatpush3.xpose.msk.msra.mxu0 %vm88_vm0, %v95_v11 }
  0x18   :  { %533 = vmatprep.subr.msk.mxu0 %vm88_vm0, %v94_v13 }
  0x19   :  { %551 = vmatpush3.xpose.msk.msra.mxu1 %vm88_vm0, %v209_v12 }
  0x1a   :  { %552 = vmatprep.subr.msk.mxu1 %vm88_vm0, %v208_v14 }
  0x1b   :  { %534 = vmatpush3.xpose.msk.msra.mxu0 %vm88_vm0, %v94_v13 }
  0x1c   :  { %535 = vmatprep.subr.msk.mxu0 %vm88_vm0, %v93_v15 }
  0x1d   :  { %553 = vmatpush3.xpose.msk.msra.mxu1 %vm88_vm0, %v208_v14 }
  0x1e   :  { %554 = vmatprep.subr.msk.mxu1 %vm88_vm0, %v207_v16 }
  0x1f   :  { %536 = vmatpush3.xpose.msk.msra.mxu0 %vm88_vm0, %v93_v15 }
  0x20   :  { %559 = vmatprep.subr.mxu0 %v339_v18 }
  0x21   :  { %555 = vmatpush3.xpose.msk.msra.mxu1 %vm88_vm0, %v207_v16 }
  0x22   :  { %538 = vmatmul.mubr.msk.f32.vlgmr.msra.gmra.mxu0 %vm88_vm0, %v92_v17 }
  0x23   :  { %560 = vmatpush3.msra.mxu0 %v339_v18 }
  0x24   :  { %557 = vmatmul.mubr.msk.f32.vlgmr.msra.gmra.mxu1 %vm88_vm0, %v92_v17  ;;  %561 = vmatprep.subr.mxu0 %v338_v19 }
  0x25   :  { %562 = vmatpush3.msra.mxu0 %v338_v19 }
  0x26   :  { %563 = vmatprep.subr.mxu0 %v337_v20 }
  0x27   :  { %564 = vmatpush3.msra.mxu0 %v337_v20 }
  0x28   :  { %565 = vmatprep.subr.mxu0 %v336_v21 }
  0x29   :  { %566 = vmatpush3.msra.mxu0 %v336_v21 }
  0x2a   :  { %567 = vmatprep.subr.mxu0 %v335_v22 }
  0x2b   :  { %568 = vmatpush3.msra.mxu0 %v335_v22 }
  0x2c   :  { %569 = vmatprep.subr.mxu0 %v334_v23 }
  0x2d   :  { %570 = vmatpush3.msra.mxu0 %v334_v23 }
  0x2e   :  { %571 = vmatprep.subr.mxu0 %v333_v24 }
  0x2f   :  { %572 = vmatpush3.msra.mxu0 %v333_v24 }
  0x30   :  { %573 = vmatprep.subr.mxu0 %v332_v25 }
  0x31   :  { %574 = vmatpush3.msra.mxu0 %v332_v25 }
  0xe2   :  { %v539_v27 = vpop.f32.mrf.mxu0 }
  0xe3   :  { %v488_v28 = vmul.f32 -1.442695, %v539_v27 }
  0xe4   :  { %v198_v29 = vpop.f32.mrf.mxu0  ;;  %v558_v36 = vpop.f32.mrf.mxu1 }
  0xe5   :  { %582 = vpow2.f32 %v488_v28  ;;  %v487_v30 = vmul.f32 -1.442695, %v198_v29 }
  0xe6   :  { %v305_v40 = vpop.f32.mrf.mxu1 }
  0xe7   :  { %584 = vpow2.f32 %v487_v30 }
  0xf2   :  { %v583_v31 = vpop.eup %582 }
  0xf3   :  { %v321_v32 = vadd.f32 1.0, %v583_v31 }
  0xf4   :  { %v585_v33 = vpop.eup %584 }
  0xf5   :  { %586 = vrcp.f32 %v321_v32  ;;  %v320_v34 = vadd.f32 1.0, %v585_v33 }
  0xf7   :  { %588 = vrcp.f32 %v320_v34 }
 0x102   :  { %v587_v35 = vpop.eup %586 }
 0x103   :  { %v327_v38 = vmul.f32 %v587_v35, %v539_v27 }
 0x104   :  { %v589_v37 = vpop.eup %588 }
 0x105   :  { %v326_v39 = vmul.f32 %v589_v37, %v198_v29  ;;  %v329_v42 = vmul.f32 %v558_v36, %v327_v38 }
 0x107   :  { %v328_v41 = vmul.f32 %v326_v39, %v305_v40 }
 0x109   :  { %575 = vmatprep.mubr.msk.f32.mxu0 %vm340_vm1, %v328_v41 }
 0x10a   :  { %576 = vmatmul.mubr.msk.f32.vlgmr.msra.gmra.mxu0 %vm340_vm1, %v329_v42 }
 0x1ca   :  { %v577_v44 = vpop.f32.mrf.mxu0 }
 0x1cb   :  { %v423_v46 = vadd.f32 %v577_v44, %v331_v43 }
 0x1cc   :  { %v413_v47 = vpop.f32.mrf.mxu0 }
 0x1cd   :  { %425 = vst.msk [vmem:[#allocation2 + $0x8] sm:$0xff] %vm88_vm0, %v423_v46  ;;  %v422_v48 = vadd.f32 %v413_v47, %v330_v45 }
 0x1cf   :  { %424 = vst.msk [vmem:[#allocation2] sm:$0xff] %vm88_vm0, %v422_v48 }
 0x1d4   :  { %v430_v49 = vld [vmem:[#allocation2 + $0x8] sm:$0xff] }
 0x1d5   :  { %432 = vst.msk [vmem:[#allocation3 + $0x8] sm:$0xff] %vm88_vm0, %v430_v49 }
 0x1d6   :  { %v429_v50 = vld [vmem:[#allocation2] sm:$0xff] }
 0x1d7   :  { %431 = vst.msk [vmem:[#allocation3] sm:$0xff] %vm88_vm0, %v429_v50 }
 0x1d8   :  { %601 = shalt.err (!%p598_p4)
}
 0x1d9   :  { %s614_s14 = smov 128   ;;  %s615_s15 = smov 8  }
 0x1da   :  { %444 = dma.vmem_to_hbm [thread:$0]  %s439_s12, 256, %s768_s4, [#allocation4], %s614_s14, %s614_s14, %s615_s15  }
 0x1db   :  { %610 = dma.done.wait [#allocation4], 256  }
 0x1dc   :  { %611 = vsyncadd [#allocation4], 4294967040 }
 0x1dd   :  { %448 = vsyncpa [#allocation4], 1 }

</bundles_post_ra>
